<compile_context>
chip_gen: v7x
topology: tpu7x:2x2x1
jax: 0.10.0
libtpu: 0.0.40
codegen_flags: <defaults>
</compile_context>

<pallas_src>
import math

import jax
import jax.numpy as jnp
from jax.experimental import pallas as pl
from jax.experimental.pallas import tpu as pltpu

_LANES = 128  # lane width of the packed output slab / padded second layer


def _round_up(x, m):
    return (x + m - 1) // m * m


def _make_location_kernel(loc_std: float):
    loc_std = float(loc_std)
    # log N(l_t | mu, std) with l_t = mu + std*eps == -0.5*eps^2 - log(std) - 0.5*log(2*pi)
    logpi_const = -2.0 * (math.log(loc_std) + 0.5 * math.log(2.0 * math.pi))

    def kernel(h_ref, w1_ref, b1_ref, w2_ref, b2_ref, eps_ref, out_ref):
        # --- fc + ReLU: MXU matmul in the input dtype, f32 accumulation ------
        feat = jnp.dot(h_ref[...], w1_ref[...],
                       preferred_element_type=jnp.float32)
        feat = jnp.maximum(feat + b1_ref[...].astype(jnp.float32), 0.0)  # [TB, hid] f32

        # --- fc_lt + tanh on the lane-padded (hid x 128) second layer --------
        mu = jnp.dot(feat.astype(w2_ref.dtype), w2_ref[...],
                     preferred_element_type=jnp.float32)
        mu = jnp.tanh(mu + b2_ref[...].astype(jnp.float32))  # [TB, 128]; lanes>=2 == 0

        # --- reparameterized sample + log-prob (clamp AFTER log_prob) --------
        eps = eps_ref[...].astype(jnp.float32)                # [TB, 2]
        eps0 = eps[:, 0:1]                                    # [TB, 1]
        eps1 = eps[:, 1:2]                                    # [TB, 1]
        lane = jax.lax.broadcasted_iota(jnp.int32, mu.shape, 1)
        eps_pad = jnp.where(lane == 0, eps0,
                            jnp.where(lane == 1, eps1, 0.0))  # [TB, 128]
        l_t = jnp.clip(mu + loc_std * eps_pad, -1.0, 1.0)
        # sum over the 2 real location dims; no XLU reduction needed.
        log_pi = -0.5 * (eps0 * eps0 + eps1 * eps1) + logpi_const  # [TB, 1]

        # --- pack one lane-dense slab: cols 0-1 = l_t, col 2 = log_pi --------
        out_ref[...] = jnp.where(lane == 2, log_pi, l_t)

    return kernel


def location_network_forward(h_t, w1, b1, w2, b2, eps, loc_std, *, block_b=512):
    """Pallas-backed forward of LocationNetwork.

    h_t : [B, n_hiddens]  (f32, or bf16 for the v6e/v7x streaming path)
    w1  : [n_hiddens, hid]   (transposed vs. torch.nn.Linear)
    b1  : [1, hid]
    w2  : [hid, 2]
    b2  : [1, 2]
    eps : [B, 2] f32 standard-normal noise (the rsample noise)
    Returns (log_pi [B] f32, l_t [B, 2] f32).
    """
    B, H = h_t.shape
    hid = w1.shape[1]

    # Batch tile: multiple of 16 sublanes (bf16-safe), capped by block_b.
    TB = min(_round_up(block_b, 16), _round_up(B, 16))
    B_pad = _round_up(B, TB)
    if B_pad != B:
        h_t = jnp.pad(h_t, ((0, B_pad - B), (0, 0)))
        eps = jnp.pad(eps, ((0, B_pad - B), (0, 0)))

    # Lane-pad the tiny second layer so MXU output / tanh / store are lane-dense.
    w2p = jnp.pad(w2, ((0, 0), (0, _LANES - w2.shape[1])))
    b2p = jnp.pad(b2, ((0, 0), (0, _LANES - b2.shape[1])))

    grid = (B_pad // TB,)
    kernel = _make_location_kernel(loc_std)

    # h_t / eps / out stream per tile; weights get constant index_maps and
    # stay resident in VMEM across the whole grid.
    in_specs = [
        pl.BlockSpec((TB, H), lambda i: (i, 0)),
        pl.BlockSpec((H, hid), lambda i: (0, 0)),
        pl.BlockSpec((1, hid), lambda i: (0, 0)),
        pl.BlockSpec((hid, _LANES), lambda i: (0, 0)),
        pl.BlockSpec((1, _LANES), lambda i: (0, 0)),
        pl.BlockSpec((TB, eps.shape[1]), lambda i: (i, 0)),
    ]
    out_specs = pl.BlockSpec((TB, _LANES), lambda i: (i, 0))

    # Explicit VMEM budget: double-buffered streaming tiles + resident weights
    # with 2x headroom, capped at 48 MiB (under v7x's 64 MiB physical VMEM).
    bytes_h = h_t.dtype.itemsize
    per_step = (2 * TB * H * bytes_h
                + 2 * TB * eps.shape[1] * eps.dtype.itemsize
                + 2 * TB * _LANES * 4)
    weight_bytes = ((H * hid + hid) * w1.dtype.itemsize
                    + (hid * _LANES + _LANES) * w2p.dtype.itemsize)
    vmem_limit = int(min(max(2 * (per_step + weight_bytes), 8 << 20), 48 << 20))

    cost = pl.CostEstimate(
        flops=2 * B_pad * H * hid + 2 * B_pad * hid * _LANES,
        transcendentals=B_pad * _LANES,
        bytes_accessed=(B_pad * H * bytes_h
                        + B_pad * eps.shape[1] * eps.dtype.itemsize
                        + B_pad * _LANES * 4
                        + weight_bytes),
    )

    out = pl.pallas_call(
        kernel,
        out_shape=jax.ShapeDtypeStruct((B_pad, _LANES), jnp.float32),
        grid_spec=pltpu.PrefetchScalarGridSpec(
            num_scalar_prefetch=0,
            grid=grid,
            in_specs=in_specs,
            out_specs=out_specs,
        ),
        compiler_params=pltpu.CompilerParams(
            dimension_semantics=("parallel",),
            vmem_limit_bytes=vmem_limit,
        ),
        cost_estimate=cost,
    )(h_t, w1, b1, w2p, b2p, eps)

    l_t = out[:B, 0:2]
    log_pi = out[:B, 2]
    return log_pi, l_t


def init_params(key, n_hiddens):
    """Deterministic init mimicking nn.Linear's U(-1/sqrt(fan_in), 1/sqrt(fan_in))."""
    hid = n_hiddens // 2
    k1, k2, k3, k4 = jax.random.split(key, 4)
    bound1 = 1.0 / math.sqrt(n_hiddens)
    bound2 = 1.0 / math.sqrt(hid)
    w1 = jax.random.uniform(k1, (n_hiddens, hid), jnp.float32, -bound1, bound1)
    b1 = jax.random.uniform(k2, (1, hid), jnp.float32, -bound1, bound1)
    w2 = jax.random.uniform(k3, (hid, 2), jnp.float32, -bound2, bound2)
    b2 = jax.random.uniform(k4, (1, 2), jnp.float32, -bound2, bound2)
    return w1, b1, w2, b2


if __name__ == "__main__":
    B = 2
    n_hiddens = 32
    loc_std = 0.17

    key = jax.random.PRNGKey(0)
    k_param, k_h, k_eps = jax.random.split(key, 3)

    w1, b1, w2, b2 = init_params(k_param, n_hiddens)
    h_t = jax.random.normal(k_h, (B, n_hiddens), jnp.float32)
    eps = jax.random.normal(k_eps, (B, 2), jnp.float32)

    # --- f32 path (exact reference check) --------------------------------
    log_pi, l_t = location_network_forward(h_t, w1, b1, w2, b2, eps, loc_std)
    jax.block_until_ready((log_pi, l_t))

    feat = jnp.maximum(h_t @ w1 + b1, 0.0)
    mu = jnp.tanh(feat @ w2 + b2)
    l_raw = mu + loc_std * eps
    lp_ref = (-((l_raw - mu) ** 2) / (2 * loc_std ** 2)
              - math.log(loc_std) - 0.5 * math.log(2 * math.pi)).sum(axis=1)
    l_ref = jnp.clip(l_raw, -1.0, 1.0)

    assert log_pi.shape == (B,) and l_t.shape == (B, 2)
    assert jnp.allclose(log_pi, lp_ref, atol=1e-5), (log_pi, lp_ref)
    assert jnp.allclose(l_t, l_ref, atol=1e-5), (l_t, l_ref)

    # --- bf16 streaming path (v6e/v7x): bf16 matmul operands, f32 math ----
    log_pi_bf, l_t_bf = location_network_forward(
        h_t.astype(jnp.bfloat16), w1.astype(jnp.bfloat16), b1.astype(jnp.bfloat16),
        w2.astype(jnp.bfloat16), b2.astype(jnp.bfloat16), eps, loc_std)
    jax.block_until_ready((log_pi_bf, l_t_bf))
    assert jnp.allclose(log_pi_bf, lp_ref, atol=1e-4)  # log_pi depends only on f32 eps
    assert jnp.allclose(l_t_bf, l_ref, atol=1e-1)

    print("KERNEL_OK")
</pallas_src>

<mosaic_0001>
module attributes {stable_mosaic.version = 11 : i64} {
  func.func @kernel(%arg0: i32, %arg1: memref<16x32xf32, #tpu.memory_space<vmem>>, %arg2: memref<32x16xf32, #tpu.memory_space<vmem>>, %arg3: memref<1x16xf32, #tpu.memory_space<vmem>>, %arg4: memref<16x128xf32, #tpu.memory_space<vmem>>, %arg5: memref<1x128xf32, #tpu.memory_space<vmem>>, %arg6: memref<16x2xf32, #tpu.memory_space<vmem>>, %arg7: memref<16x128xf32, #tpu.memory_space<vmem>>) attributes {dimension_semantics = [#tpu.dimension_semantics<parallel>], iteration_bounds = array<i64: 1>, scalar_prefetch = 0 : i64, scratch_operands = 0 : i64, tpu.core_type = #tpu.core_type<tc>, window_params = [{transform_indices = @transform_0, window_bounds = array<i64: 16, 32>}, {pipeline_mode = #tpu.pipeline_mode<synchronous>, transform_indices = @transform_1, window_bounds = array<i64: 32, 16>}, {pipeline_mode = #tpu.pipeline_mode<synchronous>, transform_indices = @transform_2, window_bounds = array<i64: 1, 16>}, {pipeline_mode = #tpu.pipeline_mode<synchronous>, transform_indices = @transform_3, window_bounds = array<i64: 16, 128>}, {pipeline_mode = #tpu.pipeline_mode<synchronous>, transform_indices = @transform_4, window_bounds = array<i64: 1, 128>}, {transform_indices = @transform_5, window_bounds = array<i64: 16, 2>}, {transform_indices = @transform_6, window_bounds = array<i64: 16, 128>}]} {
    %c0 = arith.constant 0 : index
    %c0_0 = arith.constant 0 : index
    %0 = vector.load %arg1[%c0, %c0_0] : memref<16x32xf32, #tpu.memory_space<vmem>>, vector<16x32xf32>
    %c0_1 = arith.constant 0 : index
    %c0_2 = arith.constant 0 : index
    %1 = vector.load %arg2[%c0_1, %c0_2] : memref<32x16xf32, #tpu.memory_space<vmem>>, vector<32x16xf32>
    %cst = arith.constant dense<0.000000e+00> : vector<16x16xf32>
    %2 = tpu.matmul %0, %1, %cst {dimension_numbers = #tpu.dot_dimension_numbers<[1], [0], [0], [1], [0, 0, 1, 1], [], []>} : vector<16x32xf32>, vector<32x16xf32>, vector<16x16xf32> -> vector<16x16xf32>
    %c0_3 = arith.constant 0 : index
    %c0_4 = arith.constant 0 : index
    %3 = vector.load %arg3[%c0_3, %c0_4] : memref<1x16xf32, #tpu.memory_space<vmem>>, vector<1x16xf32>
    %4 = vector.broadcast %3 : vector<1x16xf32> to vector<16x16xf32>
    %5 = arith.addf %2, %4 : vector<16x16xf32>
    %cst_5 = arith.constant 0.000000e+00 : f32
    %6 = vector.broadcast %cst_5 : f32 to vector<16x16xf32>
    %7 = arith.maximumf %5, %6 : vector<16x16xf32>
    %c0_6 = arith.constant 0 : index
    %c0_7 = arith.constant 0 : index
    %8 = vector.load %arg4[%c0_6, %c0_7] : memref<16x128xf32, #tpu.memory_space<vmem>>, vector<16x128xf32>
    %cst_8 = arith.constant dense<0.000000e+00> : vector<16x128xf32>
    %9 = tpu.matmul %7, %8, %cst_8 {dimension_numbers = #tpu.dot_dimension_numbers<[1], [0], [0], [1], [0, 0, 1, 1], [], []>} : vector<16x16xf32>, vector<16x128xf32>, vector<16x128xf32> -> vector<16x128xf32>
    %c0_9 = arith.constant 0 : index
    %c0_10 = arith.constant 0 : index
    %10 = vector.load %arg5[%c0_9, %c0_10] : memref<1x128xf32, #tpu.memory_space<vmem>>, vector<1x128xf32>
    %11 = vector.broadcast %10 : vector<1x128xf32> to vector<16x128xf32>
    %12 = arith.addf %9, %11 : vector<16x128xf32>
    %13 = math.tanh %12 : vector<16x128xf32>
    %c0_11 = arith.constant 0 : index
    %c0_12 = arith.constant 0 : index
    %14 = vector.load %arg6[%c0_11, %c0_12] : memref<16x2xf32, #tpu.memory_space<vmem>>, vector<16x2xf32>
    %15 = vector.extract_strided_slice %14 {offsets = [0, 0], sizes = [16, 1], strides = [1, 1]} : vector<16x2xf32> to vector<16x1xf32>
    %16 = vector.extract_strided_slice %14 {offsets = [0, 1], sizes = [16, 1], strides = [1, 1]} : vector<16x2xf32> to vector<16x1xf32>
    %17 = tpu.iota {dimensions = array<i32: 1>} : vector<16x128xi32>
    %c0_i32 = arith.constant 0 : i32
    %18 = vector.broadcast %c0_i32 : i32 to vector<16x128xi32>
    %19 = arith.cmpi eq, %17, %18 : vector<16x128xi32>
    %c1_i32 = arith.constant 1 : i32
    %20 = vector.broadcast %c1_i32 : i32 to vector<16x128xi32>
    %21 = arith.cmpi eq, %17, %20 : vector<16x128xi32>
    %cst_13 = arith.constant 0.000000e+00 : f32
    %22 = vector.shape_cast %16 : vector<16x1xf32> to vector<16x1xf32>
    %23 = vector.broadcast %22 : vector<16x1xf32> to vector<16x128xf32>
    %24 = vector.broadcast %cst_13 : f32 to vector<16x128xf32>
    %25 = arith.select %21, %23, %24 : vector<16x128xi1>, vector<16x128xf32>
    %26 = vector.shape_cast %15 : vector<16x1xf32> to vector<16x1xf32>
    %27 = vector.broadcast %26 : vector<16x1xf32> to vector<16x128xf32>
    %28 = arith.select %19, %27, %25 : vector<16x128xi1>, vector<16x128xf32>
    %cst_14 = arith.constant 1.700000e-01 : f32
    %29 = vector.broadcast %cst_14 : f32 to vector<16x128xf32>
    %30 = arith.mulf %29, %28 : vector<16x128xf32>
    %31 = arith.addf %13, %30 : vector<16x128xf32>
    %cst_15 = arith.constant -1.000000e+00 : f32
    %cst_16 = arith.constant 1.000000e+00 : f32
    %32 = vector.broadcast %cst_15 : f32 to vector<16x128xf32>
    %33 = arith.maximumf %32, %31 : vector<16x128xf32>
    %34 = vector.broadcast %cst_16 : f32 to vector<16x128xf32>
    %35 = arith.minimumf %34, %33 : vector<16x128xf32>
    %36 = arith.mulf %15, %15 : vector<16x1xf32>
    %37 = arith.mulf %16, %16 : vector<16x1xf32>
    %38 = arith.addf %36, %37 : vector<16x1xf32>
    %cst_17 = arith.constant -5.000000e-01 : f32
    %39 = vector.broadcast %cst_17 : f32 to vector<16x1xf32>
    %40 = arith.mulf %39, %38 : vector<16x1xf32>
    %cst_18 = arith.constant 1.70603657 : f32
    %41 = vector.broadcast %cst_18 : f32 to vector<16x1xf32>
    %42 = arith.addf %40, %41 : vector<16x1xf32>
    %c2_i32 = arith.constant 2 : i32
    %43 = vector.broadcast %c2_i32 : i32 to vector<16x128xi32>
    %44 = arith.cmpi eq, %17, %43 : vector<16x128xi32>
    %45 = vector.shape_cast %42 : vector<16x1xf32> to vector<16x1xf32>
    %46 = vector.broadcast %45 : vector<16x1xf32> to vector<16x128xf32>
    %47 = arith.select %44, %46, %35 : vector<16x128xi1>, vector<16x128xf32>
    %c0_19 = arith.constant 0 : index
    %c0_20 = arith.constant 0 : index
    %48 = vector.load %arg7[%c0_19, %c0_20] : memref<16x128xf32, #tpu.memory_space<vmem>>, vector<16x128xf32>
    tpu.vector_store %arg7[%c0_19, %c0_20], %47 {strides = array<i32>} : memref<16x128xf32, #tpu.memory_space<vmem>>, vector<16x128xf32>,
    return
  }
  func.func @transform_0(%arg0: i32) -> (i32, i32) {
    %c0_i32 = arith.constant 0 : i32
    %c0_i32_0 = arith.constant 0 : i32
    return %arg0, %c0_i32 : i32, i32
  }
  func.func @transform_1(%arg0: i32) -> (i32, i32) {
    %c0_i32 = arith.constant 0 : i32
    %c0_i32_0 = arith.constant 0 : i32
    %c0_i32_1 = arith.constant 0 : i32
    return %c0_i32, %c0_i32_0 : i32, i32
  }
  func.func @transform_2(%arg0: i32) -> (i32, i32) {
    %c0_i32 = arith.constant 0 : i32
    %c0_i32_0 = arith.constant 0 : i32
    %c0_i32_1 = arith.constant 0 : i32
    return %c0_i32, %c0_i32_0 : i32, i32
  }
  func.func @transform_3(%arg0: i32) -> (i32, i32) {
    %c0_i32 = arith.constant 0 : i32
    %c0_i32_0 = arith.constant 0 : i32
    %c0_i32_1 = arith.constant 0 : i32
    return %c0_i32, %c0_i32_0 : i32, i32
  }
  func.func @transform_4(%arg0: i32) -> (i32, i32) {
    %c0_i32 = arith.constant 0 : i32
    %c0_i32_0 = arith.constant 0 : i32
    %c0_i32_1 = arith.constant 0 : i32
    return %c0_i32, %c0_i32_0 : i32, i32
  }
  func.func @transform_5(%arg0: i32) -> (i32, i32) {
    %c0_i32 = arith.constant 0 : i32
    %c0_i32_0 = arith.constant 0 : i32
    return %arg0, %c0_i32 : i32, i32
  }
  func.func @transform_6(%arg0: i32) -> (i32, i32) {
    %c0_i32 = arith.constant 0 : i32
    %c0_i32_0 = arith.constant 0 : i32
    return %arg0, %c0_i32 : i32, i32
  }
}

</mosaic_0001>

<bundles_post_ra>
// kernel: tpu_custom_call.1
= control target key start
LH: loop header
LB: loop body
LE: loop exit
PB: predicated region body
PF: predicated region fallthrough
CT: control target
= control target key end

     0   :  { %vm37_vm0 = vcmask 261120   ;;  %s473_s0 = inlined_call_operand.vmem [shape: f32[16,32], index: 0, kind: input, shape index: {}]   ;;  %s474_s1 = inlined_call_operand.vmem [shape: f32[32,16], index: 1, kind: input, shape index: {}]   ;;  %s475_s2 = inlined_call_operand.vmem [shape: f32[1,16], index: 2, kind: input, shape index: {}]   ;;  %s476_s3 = inlined_call_operand.vmem [shape: f32[16,128], index: 3, kind: input, shape index: {}]   ;;  %s477_s4 = inlined_call_operand.vmem [shape: f32[1,128], index: 4, kind: input, shape index: {}]   ;;  %s478_s5 = inlined_call_operand.vmem [shape: f32[16,2], index: 5, kind: input, shape index: {}]   ;;  %s479_s6 = inlined_call_operand.hbm [shape: f32[16,128], index: 6, kind: output, shape index: {}]  }
   0x1   :  { %v26_v0 = vld [vmem:[%s474_s1] sm:$0xff]  ;;  %v27_v1 = vld [vmem:[%s474_s1 + $0x8] sm:$0xff]  ;;  %v28_v2 = vld [vmem:[%s474_s1 + $0x10] sm:$0xff] }
   0x2   :  { %v333_v3 = vpack.c.bf16 %v27_v1, %v26_v0  ;;  %v29_v4 = vld [vmem:[%s474_s1 + $0x18] sm:$0xff]  ;;  %v24_v5 = vld [vmem:[%s473_s0] sm:$0xff]  ;;  %v215_v8 = vld [vmem:[%s478_s5 + $0x8] sm:$0xff] }
   0x3   :  { %v337_v6 = vpack.c.bf16 %v29_v4, %v28_v2  ;;  %323 = vmatprep.mubr.msk.f32.mxu0 %vm37_vm0, %v24_v5  ;;  %v214_v7 = vld [vmem:[%s478_s5] sm:$0xff] }
   0x4   :  { %11 = vsyncpa [#allocation3], 0  ;;  %334 = vmatprep.subr.bf16.mxu0 %v333_v3  ;;  %v250_v9 = vmul.f32 %v214_v7, %v214_v7  ;;  %s382_s1 = smov 127   ;;  %v251_v10 = vmul.f32 %v215_v8, %v215_v8  ;;  %v25_v11 = vld [vmem:[%s473_s0 + $0x8] sm:$0xff]  ;;  %v121_v12 = vld [vmem:[%s476_s3] sm:$0xff]  ;;  %v383_v15 = vmov 1   ;;  %v216_v33 = vlaneseq }
   0x5   :  { %336 = vmatpush3.bf16.msra.mxu0 %v333_v3  ;;  %v122_v13 = vld [vmem:[%s476_s3 + $0x8] sm:$0xff]  ;;  %351 = vset.pattern.permute.xlu1 %v383_v15  ;;  %v384_v16 = vmov 0   ;;  %v297_v25 = vld [vmem:[%s475_s2] ss:$0 sm:$0xff]  ;;  %vm130_vm1 = vcmask 130048   ;;  %s385_s2 = smov [#allocation2]  }
   0x6   :  { %338 = vmatprep.subr.bf16.mxu0 %v337_v6  ;;  %254 = vrot.lane.b32.xlu0 %v250_v9, %s382_s1  ;;  %v341_v14 = vpack.c.bf16 %v122_v13, %v121_v12  ;;  %v300_v34 = vld [vmem:[%s477_s4] ss:$0 sm:$0xff]  ;;  %v217_v35 = vand.u32 127, %v216_v33  ;;  %s286_s4 = sshll.u32 %s385_s2, 4  ;;  %s287_s4 = int_to_ptr.vmem [resolvable:$true] %s286_s4 }
   0x7   :  { %352 = vset.pattern.permute.xlu0 %v384_v16  ;;  %222 = vperm.xlu1 %351, %v214_v7   ;;  %s358_s18 = scalar_lea.vmem %s287_s4, 256  ;;  %p363_p1 = scmp.lt.s32.totalorder %s287_s4, %s287_s4 }
   0x8   :  { %342 = vmatprep.subr.bf16.mxu1 %v341_v14  ;;  %vm219_vm2 = vcmp.eq.s32.totalorder %v217_v35, 1  ;;  %vm218_vm3 = vcmp.eq.s32.totalorder %v217_v35, 0  ;;  %vm266_vm4 = vcmp.eq.s32.totalorder %v217_v35, 2  ;;  %p359_p0 = scmp.ne.s32.totalorder %s287_s4, %s358_s18  ;;  %p364_p2 = scmp.lt.s32.totalorder %s358_s18, %s358_s18 }
   0x9   :  { %340 = vmatpush3.bf16.msra.mxu0 %v337_v6  ;;  %344 = vmatpush3.bf16.msra.mxu1 %v341_v14 }
   0xa   :  { %256 = vrot.lane.b32.xlu0 %v251_v10, %s382_s1  ;;  %p365_p3 = por %p364_p2, %p363_p1 }
   0xb   :  { %227 = vperm.xlu1 %351, %v215_v8  }
   0xc   :  { %324 = vmatmul.mubr.msk.f32.vlgmr.msra.gmra.mrb[0].mxu0 %vm37_vm0, %v25_v11  ;;  %p366_p4 = pnand %p365_p3, %p359_p0 }
   0xe   :  { %233 = vperm.xlu0 %352, %v214_v7  }
   0xf   :  { %353 = vset.pattern.permute.xlu1 %v384_v16 }
  0x10   :  { %237 = vperm.xlu1 %353, %v215_v8  }
  0x78   :  { %v255_v17 = vpop.permute.xlu0 %254 }
  0x79   :  { %v260_v18 = vadd.f32 %v255_v17, %v250_v9 }
  0x7b   :  { %v262_v19 = vmul.f32 -0.5, %v260_v18 }
  0x7c   :  { %v257_v20 = vpop.permute.xlu0 %256 }
  0x7d   :  { %v264_v21 = vadd.f32 1.7060366, %v262_v19  ;;  %v261_v22 = vadd.f32 %v257_v20, %v251_v10 }
  0x7f   :  { %v263_v23 = vmul.f32 -0.5, %v261_v22  ;;  %269 = vperm.xlu1 %353, %v264_v21  }
  0x81   :  { %v265_v24 = vadd.f32 1.7060366, %v263_v23 }
  0x83   :  { %274 = vperm.xlu0 %352, %v265_v24  }
  0x86   :  { %v223_v32 = vpop.permute.xlu1 %222 }
  0x87   :  { %v230_v43 = vsel %vm219_vm2, %v223_v32, 0.0 }
  0x8a   :  { %v228_v36 = vpop.permute.xlu1 %227 }
  0x8b   :  { %v231_v41 = vsel %vm219_vm2, %v228_v36, 0.0 }
  0x8d   :  { %v234_v44 = vpop.permute.xlu0 %233 }
  0x8e   :  { %v240_v46 = vsel %vm218_vm3, %v234_v44, %v230_v43 }
  0x8f   :  { %v238_v42 = vpop.permute.xlu1 %237  ;;  %v242_v49 = vmul.f32 0.17, %v240_v46 }
  0x90   :  { %v241_v45 = vsel %vm218_vm3, %v238_v42, %v231_v41 }
  0x91   :  { %v243_v47 = vmul.f32 0.17, %v241_v45 }
  0xdf   :  { %v325_v26 = vpop.f32.mrb[0].mxu0 }
  0xe0   :  { %v116_v27 = vadd.f32 %v325_v26, %v297_v25  ;;  %v110_v28 = vpop.f32.mrb[1].mxu0 }
  0xe1   :  { %v111_v29 = vadd.f32 %v297_v25, %v110_v28 }
  0xe2   :  { %v120_v31 = vmax.f32 %v116_v27, 0.0 }
  0xe3   :  { %v119_v30 = vmax.f32 %v111_v29, 0.0 }
  0xe5   :  { %330 = vmatprep.mubr.msk.f32.mxu1 %vm130_vm1, %v119_v30 }
  0xe6   :  { %331 = vmatmul.mubr.msk.f32.vlgmr.msra.gmra.mrb[0].mxu1 %vm130_vm1, %v120_v31 }
  0xfe   :  { %v270_v56 = vpop.permute.xlu1 %269 }
 0x102   :  { %v275_v55 = vpop.permute.xlu0 %274 }
 0x1b9   :  { %v332_v37 = vpop.f32.mrb[0].mxu1 }
 0x1ba   :  { %v209_v38 = vadd.f32 %v332_v37, %v300_v34  ;;  %v203_v39 = vpop.f32.mrb[1].mxu1 }
 0x1bb   :  { %v204_v40 = vadd.f32 %v300_v34, %v203_v39 }
 0x1bc   :  { %354 = vtanh.f32 %v209_v38 }
 0x1bd   :  { %356 = vtanh.f32 %v204_v40 }
 0x1c6   :  { %v355_v48 = vpop.eup %354 }
 0x1c7   :  { %v357_v50 = vpop.eup %356  ;;  %v245_v51 = vadd.f32 %v355_v48, %v243_v47 }
 0x1c8   :  { %v244_v52 = vadd.f32 %v357_v50, %v242_v49 }
 0x1c9   :  { %v304_v53 = vclamps-f32 %v245_v51, 1.0 }
 0x1ca   :  { %v303_v54 = vclamps-f32 %v244_v52, 1.0 }
 0x1cb   :  { %v278_v57 = vsel %vm266_vm4, %v275_v55, %v304_v53 }
 0x1cc   :  { %v277_v58 = vsel %vm266_vm4, %v270_v56, %v303_v54  ;;  %280 = vst [vmem:[#allocation2 + $0x8] sm:$0xff] %v278_v57 }
 0x1cd   :  { %279 = vst [vmem:[#allocation2] sm:$0xff] %v277_v58 }
 0x1ce   :  { %369 = shalt.err (!%p366_p4)
}
 0x1cf   :  { %s370_s21 = scalar_lea.hbm %s479_s6, 256 }
 0x1d0   :  { %p371_p5 = scmp.ne.s32.totalorder %s479_s6, %s370_s21  ;;  %p374_p6 = scmp.lt.u32.totalorder %s370_s21, %s479_s6 }
 0x1d2   :  { %p376_p7 = pnand %p374_p6, %p371_p5 }
 0x1d4   :  { %379 = shalt.err (!%p376_p7)
}
 0x1d5   :  { %s386_s26 = smov 128   ;;  %s387_s27 = smov 8  }
 0x1d6   :  { %292 = dma.vmem_to_hbm [thread:$0]  %s287_s4, 256, %s479_s6, [#allocation3], %s386_s26, %s386_s26, %s387_s27  }
 0x1d7   :  { %380 = dma.done.wait [#allocation3], 256  }
 0x1d8   :  { %381 = vsyncadd [#allocation3], 4294967040 }
 0x1d9   :  { %296 = vsyncpa [#allocation3], 1 }

</bundles_post_ra>
